<compile_context>
chip_gen: v6e
topology: v6e:2x2x1
jax: 0.10.0
libtpu: 0.0.40
codegen_flags: <defaults>
</compile_context>

<pallas_src>
import jax
import jax.numpy as jnp
from jax import lax
from jax.experimental import pallas as pl
from jax.experimental.pallas import tpu as pltpu


def cnn_predictor_kernel(x_ref, w0_ref, b0_ref, w1_ref, b1_ref, w2_ref,
                         b2_ref, wfc_ref, bfc_ref, out_ref):
    b_blk, seq_len, c_in = x_ref.shape
    m = b_blk * seq_len
    wd = w0_ref.dtype                      # MXU input dtype (bf16 by default)

    # Flatten (B_blk, T, C) -> (M, C).  T % 8 is asserted in the wrapper so
    # this reshape (and the inverse at the end) is a layout no-op.
    x = x_ref[...].reshape(m, c_in).astype(jnp.float32)

    # Row index within each sequence; zeroes the rows a roll would otherwise
    # wrap across sequence boundaries (causal left zero-padding).
    t_in_seq = lax.broadcasted_iota(jnp.int32, (m, 1), 0) % seq_len
    mask1 = t_in_seq < 1                    # hoisted: reused by every layer
    mask2 = t_in_seq < 2

    # Hoist bias reads once (JAX does not CSE broadcast_in_dim).
    b0 = b0_ref[...].astype(jnp.float32)
    b1 = b1_ref[...].astype(jnp.float32)
    b2 = b2_ref[...].astype(jnp.float32)
    bfc = bfc_ref[...].astype(jnp.float32)

    def conv_relu(h, w_ref, b):
        # Causal taps: result[t] = h[t - s].  Shift on the XLU in f32 (bf16
        # sublane rolls are awkward), then cast each tap to the MXU dtype
        # BEFORE the lane-axis concat so concat stores move half the bytes.
        def tap(s, mask):
            return jnp.where(mask, 0.0, pltpu.roll(h, shift=s, axis=0)).astype(wd)

        # K-axis order [h[t-2]; h[t-1]; h[t]] matches the packed weight layout.
        h_cat = jnp.concatenate([tap(2, mask2), tap(1, mask1), h.astype(wd)],
                                axis=-1)
        acc = jnp.dot(h_cat, w_ref[...], preferred_element_type=jnp.float32)
        return jnp.maximum(acc + b, 0.0)     # bias + ReLU stay f32

    h = conv_relu(x, w0_ref, b0)
    h = conv_relu(h, w1_ref, b1)
    h = conv_relu(h, w2_ref, b2)

    out = jnp.dot(h.astype(wfc_ref.dtype), wfc_ref[...],
                  preferred_element_type=jnp.float32) + bfc
    out_ref[...] = out.reshape(b_blk, seq_len, -1).astype(out_ref.dtype)


def cnn_predictor(x, params, *, b_blk=None, mxu_dtype=jnp.bfloat16):
    """x: (B, T, input_size) -> (B, T, output_size).

    params (canonical JAX layout):
      conv layers: weight (3, Cin, Cout)  [tap 0 hits x[t-2], tap 2 hits x[t]],
                   bias (Cout,)
      fc_output  : weight (H, O), bias (O,)

    mxu_dtype: dtype fed to the MXU (default bf16 for inference; pass
    jnp.float32 for an f32-faithful forward).  Accumulation / bias / ReLU are
    always f32.
    """
    (w0, b0), (w1, b1), (w2, b2), (wfc, bfc) = params
    B, T, Cin = x.shape
    H = w0.shape[2]
    O = wfc.shape[1]
    out_dtype = x.dtype

    # In-kernel (B_blk,T,C) <-> (M,C) reshapes are layout no-ops only when T
    # is sublane-aligned.
    assert T % 8 == 0, "T must be a multiple of 8"

    rup = lambda n: ((n + 127) // 128) * 128
    Hp = rup(H)                           # hidden channels lane-dense in VMEM

    wd = jnp.dtype(mxu_dtype if mxu_dtype is not None else x.dtype)

    def pack_conv(w, b, cin_p, cout_p):
        # (3, cin, cout) -> zero-pad channels -> fuse taps into (3*cin_p, cout_p)
        k, cin, cout = w.shape
        w = jnp.pad(w, ((0, 0), (0, cin_p - cin), (0, cout_p - cout)))
        w = w.reshape(k * cin_p, cout_p).astype(wd)
        b = jnp.pad(b, (0, cout_p - cout)).reshape(1, cout_p).astype(jnp.float32)
        return w, b

    # Layer 0 keeps K = 3*Cin (x is NOT channel-padded in HBM); deeper layers
    # use Hp so the Hp-wide intermediates (padded lanes are zero) line up.
    w0p, b0p = pack_conv(w0, b0, Cin, Hp)
    w1p, b1p = pack_conv(w1, b1, Hp, Hp)
    w2p, b2p = pack_conv(w2, b2, Hp, Hp)
    wfcp = jnp.pad(wfc, ((0, Hp - H), (0, 0))).astype(wd)   # O stays unpadded
    bfcp = bfc.reshape(1, O).astype(jnp.float32)

    # Feed x to the kernel in the MXU dtype: halves input DMA when bf16.
    # (Ideally the upstream encoder emits bf16 directly.)
    x_k = x if x.dtype == wd else x.astype(wd)

    if b_blk is None:
        if B >= 2:
            # >= 2 grid steps: v7x megacore sharding + DMA/compute overlap.
            # Within that, prefer the smallest block with >= 512 rows per step
            # (v6e/v5e HBM-roofline sweet spot), else the largest block that
            # still leaves >= 2 steps.
            divisors = [d for d in range(1, B // 2 + 1) if B % d == 0]
            big = [d for d in divisors if d * T >= 512]
            b_blk = big[0] if big else divisors[-1]
        else:
            b_blk = B
    assert B % b_blk == 0
    grid = (B // b_blk,)

    # Size the VMEM limit from the shapes (double-buffered I/O blocks, 2x
    # weights, f32/wd intermediates) instead of a hard-coded constant.
    m = b_blk * T
    w_bytes = sum(int(a.size) * a.dtype.itemsize
                  for a in (w0p, b0p, w1p, b1p, w2p, b2p, wfcp, bfcp))
    io_bytes = 2 * m * (Cin * x_k.dtype.itemsize
                        + O * jnp.dtype(out_dtype).itemsize)
    interm_bytes = m * (4 * (Cin + 2 * Hp + O) + wd.itemsize * 3 * Hp)
    vmem_need = io_bytes + 2 * w_bytes + interm_bytes
    # Cap at 64 MiB so the same sizing is safe on v7x; v5e/v6e have headroom.
    vmem_limit = int(min(max(2 * vmem_need, 32 << 20), 64 << 20))

    const = lambda a: pl.BlockSpec(a.shape, lambda i: (0, 0))   # VMEM-resident

    return pl.pallas_call(
        cnn_predictor_kernel,
        out_shape=jax.ShapeDtypeStruct((B, T, O), out_dtype),
        grid=grid,
        in_specs=[
            pl.BlockSpec((b_blk, T, Cin), lambda i: (i, 0, 0)),
            const(w0p), const(b0p),
            const(w1p), const(b1p),
            const(w2p), const(b2p),
            const(wfcp), const(bfcp),
        ],
        out_specs=pl.BlockSpec((b_blk, T, O), lambda i: (i, 0, 0)),
        compiler_params=pltpu.CompilerParams(
            dimension_semantics=("parallel",),   # v7x: shard batch over 2 TCs
            vmem_limit_bytes=vmem_limit),
    )(x_k, w0p, b0p, w1p, b1p, w2p, b2p, wfcp, bfcp)


def reference(x, params):
    """Pure-JAX reference matching PyTorch CausalConv1d->ReLU x3 -> Linear."""
    (w0, b0), (w1, b1), (w2, b2), (wfc, bfc) = params

    def conv(h, w, b):
        T = h.shape[1]
        out = jnp.einsum('btc,ch->bth', h, w[2])
        h1 = jnp.pad(h, ((0, 0), (1, 0), (0, 0)))[:, :T]
        out += jnp.einsum('btc,ch->bth', h1, w[1])
        h2 = jnp.pad(h, ((0, 0), (2, 0), (0, 0)))[:, :T]
        out += jnp.einsum('btc,ch->bth', h2, w[0])
        return jax.nn.relu(out + b[None, None, :])

    h = conv(x, w0, b0)
    h = conv(h, w1, b1)
    h = conv(h, w2, b2)
    return jnp.einsum('bth,ho->bto', h, wfc) + bfc[None, None, :]


if __name__ == "__main__":
    # Small shapes consistent with the module: bsz x enc_len x hid
    B, T = 2, 16
    input_size, hid_size, output_size = 32, 32, 64

    key = jax.random.PRNGKey(0)
    keys = jax.random.split(key, 9)

    def conv_params(kw, kb, cin, cout):
        # PyTorch Conv1d weight (cout, cin, K=3) -> canonical (K, cin, cout)
        w = jax.random.normal(kw, (cout, cin, 3), jnp.float32) * 0.1
        b = jax.random.normal(kb, (cout,), jnp.float32) * 0.1
        return jnp.transpose(w, (2, 1, 0)), b

    p0 = conv_params(keys[0], keys[1], input_size, hid_size)
    p1 = conv_params(keys[2], keys[3], hid_size, hid_size)
    p2 = conv_params(keys[4], keys[5], hid_size, hid_size)
    # PyTorch Linear weight (O, H) -> canonical (H, O)
    wfc = jax.random.normal(keys[6], (output_size, hid_size), jnp.float32) * 0.1
    bfc = jax.random.normal(keys[7], (output_size,), jnp.float32) * 0.1
    params = (p0, p1, p2, (jnp.transpose(wfc), bfc))

    x = jax.random.normal(keys[8], (B, T, input_size), jnp.float32)

    ref = reference(x, params)

    # Default inference path: bf16 MXU inputs, f32 accumulation.
    out = jax.block_until_ready(cnn_predictor(x, params))
    assert out.shape == (B, T, output_size)
    assert jnp.allclose(out, ref, atol=5e-2, rtol=5e-2), \
        float(jnp.max(jnp.abs(out - ref)))

    # f32 MXU path (matches the PyTorch module's f32 forward closely).
    out_f32 = jax.block_until_ready(
        cnn_predictor(x, params, mxu_dtype=jnp.float32))
    assert jnp.allclose(out_f32, ref, atol=1e-4, rtol=1e-4), \
        float(jnp.max(jnp.abs(out_f32 - ref)))

    print("KERNEL_OK")
</pallas_src>

<mosaic_0001>
module attributes {stable_mosaic.version = 11 : i64} {
  func.func @cnn_predictor_kernel(%arg0: i32, %arg1: memref<1x16x32xbf16, #tpu.memory_space<vmem>>, %arg2: memref<96x128xbf16, #tpu.memory_space<vmem>>, %arg3: memref<1x128xf32, #tpu.memory_space<vmem>>, %arg4: memref<384x128xbf16, #tpu.memory_space<vmem>>, %arg5: memref<1x128xf32, #tpu.memory_space<vmem>>, %arg6: memref<384x128xbf16, #tpu.memory_space<vmem>>, %arg7: memref<1x128xf32, #tpu.memory_space<vmem>>, %arg8: memref<128x64xbf16, #tpu.memory_space<vmem>>, %arg9: memref<1x64xf32, #tpu.memory_space<vmem>>, %arg10: memref<1x16x64xf32, #tpu.memory_space<vmem>>) attributes {dimension_semantics = [#tpu.dimension_semantics<parallel>], iteration_bounds = array<i64: 2>, scalar_prefetch = 0 : i64, scratch_operands = 0 : i64, tpu.core_type = #tpu.core_type<tc>, window_params = [{transform_indices = @transform_0, window_bounds = array<i64: 1, 16, 32>}, {pipeline_mode = #tpu.pipeline_mode<synchronous>, transform_indices = @transform_1, window_bounds = array<i64: 96, 128>}, {pipeline_mode = #tpu.pipeline_mode<synchronous>, transform_indices = @transform_2, window_bounds = array<i64: 1, 128>}, {pipeline_mode = #tpu.pipeline_mode<synchronous>, transform_indices = @transform_3, window_bounds = array<i64: 384, 128>}, {pipeline_mode = #tpu.pipeline_mode<synchronous>, transform_indices = @transform_4, window_bounds = array<i64: 1, 128>}, {pipeline_mode = #tpu.pipeline_mode<synchronous>, transform_indices = @transform_5, window_bounds = array<i64: 384, 128>}, {pipeline_mode = #tpu.pipeline_mode<synchronous>, transform_indices = @transform_6, window_bounds = array<i64: 1, 128>}, {pipeline_mode = #tpu.pipeline_mode<synchronous>, transform_indices = @transform_7, window_bounds = array<i64: 128, 64>}, {pipeline_mode = #tpu.pipeline_mode<synchronous>, transform_indices = @transform_8, window_bounds = array<i64: 1, 64>}, {transform_indices = @transform_9, window_bounds = array<i64: 1, 16, 64>}]} {
    %c0 = arith.constant 0 : index
    %c0_0 = arith.constant 0 : index
    %c0_1 = arith.constant 0 : index
    %0 = vector.load %arg1[%c0, %c0_0, %c0_1] : memref<1x16x32xbf16, #tpu.memory_space<vmem>>, vector<1x16x32xbf16>
    %1 = vector.shape_cast %0 : vector<1x16x32xbf16> to vector<16x32xbf16>
    %2 = arith.extf %1 : vector<16x32xbf16> to vector<16x32xf32>
    %3 = tpu.iota {dimensions = array<i32: 0>} : vector<16x1xi32>
    %c16_i32 = arith.constant 16 : i32
    %c0_i32 = arith.constant 0 : i32
    %4 = arith.cmpi eq, %c16_i32, %c0_i32 : i32
    %c1_i32 = arith.constant 1 : i32
    %5 = arith.select %4, %c1_i32, %c16_i32 : i32
    %6 = vector.broadcast %5 : i32 to vector<16x1xi32>
    %7 = arith.remsi %3, %6 : vector<16x1xi32>
    %c0_i32_2 = arith.constant 0 : i32
    %8 = vector.broadcast %c0_i32_2 : i32 to vector<16x1xi32>
    %9 = arith.cmpi ne, %7, %8 : vector<16x1xi32>
    %c0_i32_3 = arith.constant 0 : i32
    %10 = vector.broadcast %c0_i32_3 : i32 to vector<16x1xi32>
    %11 = arith.cmpi slt, %7, %10 : vector<16x1xi32>
    %c0_i32_4 = arith.constant 0 : i32
    %12 = arith.cmpi slt, %5, %c0_i32_4 : i32
    %13 = vector.broadcast %12 : i1 to vector<16x1xi1>
    %14 = vector.broadcast %13 : vector<16x1xi1> to vector<16x1xi1>
    %15 = arith.xori %11, %14 : vector<16x1xi1>
    %16 = arith.andi %15, %9 : vector<16x1xi1>
    %17 = vector.broadcast %5 : i32 to vector<16x1xi32>
    %18 = arith.addi %7, %17 : vector<16x1xi32>
    %19 = arith.select %16, %18, %7 : vector<16x1xi1>, vector<16x1xi32>
    %c1_i32_5 = arith.constant 1 : i32
    %20 = vector.broadcast %c1_i32_5 : i32 to vector<16x1xi32>
    %21 = arith.cmpi slt, %19, %20 : vector<16x1xi32>
    %c2_i32 = arith.constant 2 : i32
    %22 = vector.broadcast %c2_i32 : i32 to vector<16x1xi32>
    %23 = arith.cmpi slt, %19, %22 : vector<16x1xi32>
    %c0_6 = arith.constant 0 : index
    %c0_7 = arith.constant 0 : index
    %24 = vector.load %arg3[%c0_6, %c0_7] : memref<1x128xf32, #tpu.memory_space<vmem>>, vector<1x128xf32>
    %c0_8 = arith.constant 0 : index
    %c0_9 = arith.constant 0 : index
    %25 = vector.load %arg5[%c0_8, %c0_9] : memref<1x128xf32, #tpu.memory_space<vmem>>, vector<1x128xf32>
    %c0_10 = arith.constant 0 : index
    %c0_11 = arith.constant 0 : index
    %26 = vector.load %arg7[%c0_10, %c0_11] : memref<1x128xf32, #tpu.memory_space<vmem>>, vector<1x128xf32>
    %c0_12 = arith.constant 0 : index
    %c0_13 = arith.constant 0 : index
    %27 = vector.load %arg9[%c0_12, %c0_13] : memref<1x64xf32, #tpu.memory_space<vmem>>, vector<1x64xf32>
    %c2_i32_14 = arith.constant 2 : i32
    %28 = tpu.dynamic_rotate %2 by %c2_i32_14 dim 0 : vector<16x32xf32>, i32 -> vector<16x32xf32>
    %cst = arith.constant 0.000000e+00 : f32
    %29 = vector.shape_cast %23 : vector<16x1xi1> to vector<16x1xi1>
    %30 = vector.broadcast %29 : vector<16x1xi1> to vector<16x32xi1>
    %31 = vector.broadcast %cst : f32 to vector<16x32xf32>
    %32 = arith.select %30, %31, %28 : vector<16x32xi1>, vector<16x32xf32>
    %33 = arith.truncf %32 : vector<16x32xf32> to vector<16x32xbf16>
    %c1_i32_15 = arith.constant 1 : i32
    %34 = tpu.dynamic_rotate %2 by %c1_i32_15 dim 0 : vector<16x32xf32>, i32 -> vector<16x32xf32>
    %cst_16 = arith.constant 0.000000e+00 : f32
    %35 = vector.shape_cast %21 : vector<16x1xi1> to vector<16x1xi1>
    %36 = vector.broadcast %35 : vector<16x1xi1> to vector<16x32xi1>
    %37 = vector.broadcast %cst_16 : f32 to vector<16x32xf32>
    %38 = arith.select %36, %37, %34 : vector<16x32xi1>, vector<16x32xf32>
    %39 = arith.truncf %38 : vector<16x32xf32> to vector<16x32xbf16>
    %40 = arith.truncf %2 : vector<16x32xf32> to vector<16x32xbf16>
    %41 = tpu.concatenate %33, %39, %40 in 1 : vector<16x32xbf16>, vector<16x32xbf16>, vector<16x32xbf16> -> vector<16x96xbf16>
    %c0_17 = arith.constant 0 : index
    %c0_18 = arith.constant 0 : index
    %42 = vector.load %arg2[%c0_17, %c0_18] : memref<96x128xbf16, #tpu.memory_space<vmem>>, vector<96x128xbf16>
    %cst_19 = arith.constant dense<0.000000e+00> : vector<16x128xf32>
    %43 = tpu.matmul %41, %42, %cst_19 {dimension_numbers = #tpu.dot_dimension_numbers<[1], [0], [0], [1], [0, 0, 1, 1], [], []>} : vector<16x96xbf16>, vector<96x128xbf16>, vector<16x128xf32> -> vector<16x128xf32>
    %44 = vector.broadcast %24 : vector<1x128xf32> to vector<16x128xf32>
    %45 = arith.addf %43, %44 : vector<16x128xf32>
    %cst_20 = arith.constant 0.000000e+00 : f32
    %46 = vector.broadcast %cst_20 : f32 to vector<16x128xf32>
    %47 = arith.maximumf %45, %46 : vector<16x128xf32>
    %c2_i32_21 = arith.constant 2 : i32
    %48 = tpu.dynamic_rotate %47 by %c2_i32_21 dim 0 : vector<16x128xf32>, i32 -> vector<16x128xf32>
    %cst_22 = arith.constant 0.000000e+00 : f32
    %49 = vector.shape_cast %23 : vector<16x1xi1> to vector<16x1xi1>
    %50 = vector.broadcast %49 : vector<16x1xi1> to vector<16x128xi1>
    %51 = vector.broadcast %cst_22 : f32 to vector<16x128xf32>
    %52 = arith.select %50, %51, %48 : vector<16x128xi1>, vector<16x128xf32>
    %53 = arith.truncf %52 : vector<16x128xf32> to vector<16x128xbf16>
    %c1_i32_23 = arith.constant 1 : i32
    %54 = tpu.dynamic_rotate %47 by %c1_i32_23 dim 0 : vector<16x128xf32>, i32 -> vector<16x128xf32>
    %cst_24 = arith.constant 0.000000e+00 : f32
    %55 = vector.shape_cast %21 : vector<16x1xi1> to vector<16x1xi1>
    %56 = vector.broadcast %55 : vector<16x1xi1> to vector<16x128xi1>
    %57 = vector.broadcast %cst_24 : f32 to vector<16x128xf32>
    %58 = arith.select %56, %57, %54 : vector<16x128xi1>, vector<16x128xf32>
    %59 = arith.truncf %58 : vector<16x128xf32> to vector<16x128xbf16>
    %60 = arith.truncf %47 : vector<16x128xf32> to vector<16x128xbf16>
    %61 = tpu.concatenate %53, %59, %60 in 1 : vector<16x128xbf16>, vector<16x128xbf16>, vector<16x128xbf16> -> vector<16x384xbf16>
    %c0_25 = arith.constant 0 : index
    %c0_26 = arith.constant 0 : index
    %62 = vector.load %arg4[%c0_25, %c0_26] : memref<384x128xbf16, #tpu.memory_space<vmem>>, vector<384x128xbf16>
    %cst_27 = arith.constant dense<0.000000e+00> : vector<16x128xf32>
    %63 = tpu.matmul %61, %62, %cst_27 {dimension_numbers = #tpu.dot_dimension_numbers<[1], [0], [0], [1], [0, 0, 1, 1], [], []>} : vector<16x384xbf16>, vector<384x128xbf16>, vector<16x128xf32> -> vector<16x128xf32>
    %64 = vector.broadcast %25 : vector<1x128xf32> to vector<16x128xf32>
    %65 = arith.addf %63, %64 : vector<16x128xf32>
    %cst_28 = arith.constant 0.000000e+00 : f32
    %66 = vector.broadcast %cst_28 : f32 to vector<16x128xf32>
    %67 = arith.maximumf %65, %66 : vector<16x128xf32>
    %c2_i32_29 = arith.constant 2 : i32
    %68 = tpu.dynamic_rotate %67 by %c2_i32_29 dim 0 : vector<16x128xf32>, i32 -> vector<16x128xf32>
    %cst_30 = arith.constant 0.000000e+00 : f32
    %69 = vector.shape_cast %23 : vector<16x1xi1> to vector<16x1xi1>
    %70 = vector.broadcast %69 : vector<16x1xi1> to vector<16x128xi1>
    %71 = vector.broadcast %cst_30 : f32 to vector<16x128xf32>
    %72 = arith.select %70, %71, %68 : vector<16x128xi1>, vector<16x128xf32>
    %73 = arith.truncf %72 : vector<16x128xf32> to vector<16x128xbf16>
    %c1_i32_31 = arith.constant 1 : i32
    %74 = tpu.dynamic_rotate %67 by %c1_i32_31 dim 0 : vector<16x128xf32>, i32 -> vector<16x128xf32>
    %cst_32 = arith.constant 0.000000e+00 : f32
    %75 = vector.shape_cast %21 : vector<16x1xi1> to vector<16x1xi1>
    %76 = vector.broadcast %75 : vector<16x1xi1> to vector<16x128xi1>
    %77 = vector.broadcast %cst_32 : f32 to vector<16x128xf32>
    %78 = arith.select %76, %77, %74 : vector<16x128xi1>, vector<16x128xf32>
    %79 = arith.truncf %78 : vector<16x128xf32> to vector<16x128xbf16>
    %80 = arith.truncf %67 : vector<16x128xf32> to vector<16x128xbf16>
    %81 = tpu.concatenate %73, %79, %80 in 1 : vector<16x128xbf16>, vector<16x128xbf16>, vector<16x128xbf16> -> vector<16x384xbf16>
    %c0_33 = arith.constant 0 : index
    %c0_34 = arith.constant 0 : index
    %82 = vector.load %arg6[%c0_33, %c0_34] : memref<384x128xbf16, #tpu.memory_space<vmem>>, vector<384x128xbf16>
    %cst_35 = arith.constant dense<0.000000e+00> : vector<16x128xf32>
    %83 = tpu.matmul %81, %82, %cst_35 {dimension_numbers = #tpu.dot_dimension_numbers<[1], [0], [0], [1], [0, 0, 1, 1], [], []>} : vector<16x384xbf16>, vector<384x128xbf16>, vector<16x128xf32> -> vector<16x128xf32>
    %84 = vector.broadcast %26 : vector<1x128xf32> to vector<16x128xf32>
    %85 = arith.addf %83, %84 : vector<16x128xf32>
    %cst_36 = arith.constant 0.000000e+00 : f32
    %86 = vector.broadcast %cst_36 : f32 to vector<16x128xf32>
    %87 = arith.maximumf %85, %86 : vector<16x128xf32>
    %88 = arith.truncf %87 : vector<16x128xf32> to vector<16x128xbf16>
    %c0_37 = arith.constant 0 : index
    %c0_38 = arith.constant 0 : index
    %89 = vector.load %arg8[%c0_37, %c0_38] : memref<128x64xbf16, #tpu.memory_space<vmem>>, vector<128x64xbf16>
    %cst_39 = arith.constant dense<0.000000e+00> : vector<16x64xf32>
    %90 = tpu.matmul %88, %89, %cst_39 {dimension_numbers = #tpu.dot_dimension_numbers<[1], [0], [0], [1], [0, 0, 1, 1], [], []>} : vector<16x128xbf16>, vector<128x64xbf16>, vector<16x64xf32> -> vector<16x64xf32>
    %91 = vector.broadcast %27 : vector<1x64xf32> to vector<16x64xf32>
    %92 = arith.addf %90, %91 : vector<16x64xf32>
    %93 = vector.shape_cast %92 : vector<16x64xf32> to vector<1x16x64xf32>
    %c0_40 = arith.constant 0 : index
    %c0_41 = arith.constant 0 : index
    %c0_42 = arith.constant 0 : index
    %94 = vector.load %arg10[%c0_40, %c0_41, %c0_42] : memref<1x16x64xf32, #tpu.memory_space<vmem>>, vector<1x16x64xf32>
    tpu.vector_store %arg10[%c0_40, %c0_41, %c0_42], %93 {strides = array<i32>} : memref<1x16x64xf32, #tpu.memory_space<vmem>>, vector<1x16x64xf32>,
    return
  }
  func.func @transform_0(%arg0: i32) -> (i32, i32, i32) {
    %c0_i32 = arith.constant 0 : i32
    %c0_i32_0 = arith.constant 0 : i32
    %c0_i32_1 = arith.constant 0 : i32
    return %arg0, %c0_i32, %c0_i32_0 : i32, i32, i32
  }
  func.func @transform_1(%arg0: i32) -> (i32, i32) {
    %c0_i32 = arith.constant 0 : i32
    %c0_i32_0 = arith.constant 0 : i32
    %c0_i32_1 = arith.constant 0 : i32
    return %c0_i32, %c0_i32_0 : i32, i32
  }
  func.func @transform_2(%arg0: i32) -> (i32, i32) {
    %c0_i32 = arith.constant 0 : i32
    %c0_i32_0 = arith.constant 0 : i32
    %c0_i32_1 = arith.constant 0 : i32
    return %c0_i32, %c0_i32_0 : i32, i32
  }
  func.func @transform_3(%arg0: i32) -> (i32, i32) {
    %c0_i32 = arith.constant 0 : i32
    %c0_i32_0 = arith.constant 0 : i32
    %c0_i32_1 = arith.constant 0 : i32
    return %c0_i32, %c0_i32_0 : i32, i32
  }
  func.func @transform_4(%arg0: i32) -> (i32, i32) {
    %c0_i32 = arith.constant 0 : i32
    %c0_i32_0 = arith.constant 0 : i32
    %c0_i32_1 = arith.constant 0 : i32
    return %c0_i32, %c0_i32_0 : i32, i32
  }
  func.func @transform_5(%arg0: i32) -> (i32, i32) {
    %c0_i32 = arith.constant 0 : i32
    %c0_i32_0 = arith.constant 0 : i32
    %c0_i32_1 = arith.constant 0 : i32
    return %c0_i32, %c0_i32_0 : i32, i32
  }
  func.func @transform_6(%arg0: i32) -> (i32, i32) {
    %c0_i32 = arith.constant 0 : i32
    %c0_i32_0 = arith.constant 0 : i32
    %c0_i32_1 = arith.constant 0 : i32
    return %c0_i32, %c0_i32_0 : i32, i32
  }
  func.func @transform_7(%arg0: i32) -> (i32, i32) {
    %c0_i32 = arith.constant 0 : i32
    %c0_i32_0 = arith.constant 0 : i32
    %c0_i32_1 = arith.constant 0 : i32
    return %c0_i32, %c0_i32_0 : i32, i32
  }
  func.func @transform_8(%arg0: i32) -> (i32, i32) {
    %c0_i32 = arith.constant 0 : i32
    %c0_i32_0 = arith.constant 0 : i32
    %c0_i32_1 = arith.constant 0 : i32
    return %c0_i32, %c0_i32_0 : i32, i32
  }
  func.func @transform_9(%arg0: i32) -> (i32, i32, i32) {
    %c0_i32 = arith.constant 0 : i32
    %c0_i32_0 = arith.constant 0 : i32
    %c0_i32_1 = arith.constant 0 : i32
    return %arg0, %c0_i32, %c0_i32_0 : i32, i32, i32
  }
}

</mosaic_0001>

<bundles_post_ra>
// kernel: tpu_custom_call.1
= control target key start
LH: loop header
LB: loop body
LE: loop exit
PB: predicated region body
PF: predicated region fallthrough
CT: control target
= control target key end

     0   :  { %14 = vsyncpa [#allocation3], 0  ;;  %s2220_s0 = inlined_call_operand.vmem [shape: bf16[2,16,32], index: 0, kind: input, shape index: {}]   ;;  %s2221_s1 = inlined_call_operand.vmem [shape: bf16[96,128], index: 1, kind: input, shape index: {}]   ;;  %s2222_s2 = inlined_call_operand.vmem [shape: f32[1,128], index: 2, kind: input, shape index: {}]   ;;  %s2223_s3 = inlined_call_operand.hbm [shape: bf16[384,128], index: 3, kind: input, shape index: {}]   ;;  %s2224_s4 = inlined_call_operand.vmem [shape: f32[1,128], index: 4, kind: input, shape index: {}]   ;;  %s2225_s5 = inlined_call_operand.hbm [shape: bf16[384,128], index: 5, kind: input, shape index: {}]   ;;  %s2226_s6 = inlined_call_operand.vmem [shape: f32[1,128], index: 6, kind: input, shape index: {}]   ;;  %s2227_s7 = inlined_call_operand.vmem [shape: bf16[128,64], index: 7, kind: input, shape index: {}]   ;;  %s2228_s8 = inlined_call_operand.vmem [shape: f32[1,64], index: 8, kind: input, shape index: {}]   ;;  %s2229_s9 = inlined_call_operand.hbm [shape: f32[2,16,64], index: 9, kind: output, shape index: {}]  }
   0x1   :  { %15 = vsyncpa [#allocation6], 0 }
   0x2   :  { %16 = vsyncpa [#allocation4], 0 }
   0x3   :  { %18 = vsyncpa [#allocation4 + $0x1], 0  ;;  %s1921_s30 = smov 0   ;;  %s1923_s10 = smov 0  }
   0x4   :  { %s1925_s11 = smov 0   ;;  %s1927_s12 = smov 0  }
   0x5 LB: > { %s1942_s13 = sadd.s32 4294967295, %s1857_s12   ;;  %s1348_s14 = sadd.s32 4294967294, %s1857_s12   ;;  %s1857_s12 = sphi %s1927_s12, %s2251_s12   ;;  %s1853_s11 = sphi %s1925_s11, %s2250_s11   ;;  %s1849_s10 = sphi %s1923_s10, %s2249_s10   ;;  %s1845_s30 = sphi %s1921_s30, %s2248_s30  }
   0x6   : > { %s1946_s15 = sadd.s32 1, %s1857_s12   ;;  %s225_s16 = sadd.s32 1, %s1853_s11 }
   0x7   : > { %s222_s17 = ssub.s32 %s1857_s12, %s1946_s15  ;;  %p235_p0 = scmp.ne.s32.totalorder %s1853_s11, %s1849_s10 }
   0x8   : > { %p223_p1 = scmp.eq.s32.totalorder %s222_s17, 0  ;;  %p236_p2 = scmp.eq.s32.totalorder %s1942_s13, 1 }
   0x9   : > { %p241_p3 = scmp.ne.s32.totalorder %s1849_s10, %s1845_s30  ;;  %p242_p4 = scmp.eq.s32.totalorder %s1348_s14, 1 }
   0xa   : > { %s1957_s18 = scalar_select %p223_p1, %s1853_s11, %s225_s16  }
   0xb   : > { %p1959_p5 = por %p236_p2, %p235_p0  ;;  %p1963_p6 = por %p242_p4, %p241_p3 }
   0xc   : > { %p1349_p7 = scmp.ge.s32.totalorder %s1857_s12, 1  ;;  %p249_p8 = scmp.lt.s32.totalorder %s1857_s12, 3 }
   0xd   : > { %s2232_s20 = scalar_select %p1963_p6, 1, 0 }
   0xe   : > { %p2230_p9 = scmp.eq.s32.totalorder %s1942_s13, 0  ;;  %p1970_p10 = pnand %p1349_p7, %p249_p8 }
   0xf   : > { %s1859_s22 = smov [#allocation2]   ;;  %s1860_s25 = smov [#allocation5]  }
  0x10   : > { %s267_s23 = sshll.u32 %s1859_s22, 4  ;;  %p1614_p11 = pneg %p1970_p10  ;;  %s268_s23 = int_to_ptr.vmem [resolvable:$true] %s267_s23 }
  0x11   : > { %s283_s26 = sshll.u32 %s1860_s25, 4  ;;  %s1748_s27 = scalar_lea.vmem %s268_s23, 3072  ;;  %s284_s26 = int_to_ptr.vmem [resolvable:$true] %s283_s26 }
  0x12   : > { %p1978_p12 = pnand %p2230_p9, %p1614_p11  ;;  %p1749_p0 = scmp.ne.s32.totalorder %s268_s23, %s1748_s27 }
  0x13   : > { %p1756_p3 = scmp.lt.s32.totalorder %s268_s23, %s268_s23  ;;  %p1757_p4 = scmp.lt.s32.totalorder %s1748_s27, %s1748_s27 }
  0x14   : > { %p1739_p13 = pneg %p1978_p12 }
  0x15   : > { %p1758_p7 = por %p1757_p4, %p1756_p3 }
  0x16   : > { %p1751_p1 = pnand %p1749_p0, %p1739_p13 }
  0x18   : > { %p1752_p2 = pneg %p1751_p1 }
  0x1a   : > { %p1759_p8 = pnand %p1758_p7, %p1752_p2 }
  0x1c   : > { %1762 = shalt.err (!%p1759_p8)
}
  0x1d   : > { %s1861_s28 = smov 64   ;;  %s1862_s29 = smov 4  }
  0x1e   : > { %1617 = dma.hbm_to_vmem [thread:$0]  (!%p1978_p12), %s2223_s3, 3072, %s268_s23, [#allocation3], %s1861_s28, %s1861_s28, %s1862_s29  }
  0x1f   : > { %s1774_s17 = scalar_lea.vmem %s284_s26, 3072  ;;  %p1782_p9 = scmp.lt.s32.totalorder %s284_s26, %s284_s26 }
  0x20   : > { %p1775_p11 = scmp.ne.s32.totalorder %s284_s26, %s1774_s17  ;;  %p1783_p6 = scmp.lt.s32.totalorder %s1774_s17, %s1774_s17 }
  0x22   : > { %p1777_p0 = pnand %p1775_p11, %p1739_p13  ;;  %p1784_p3 = por %p1783_p6, %p1782_p9 }
  0x24   : > { %p1778_p1 = pneg %p1777_p0 }
  0x26   : > { %p1785_p2 = pnand %p1784_p3, %p1778_p1 }
  0x28   : > { %1788 = shalt.err (!%p1785_p2)
}
  0x29   : > { %1620 = dma.hbm_to_vmem [thread:$0]  (!%p1978_p12), %s2225_s5, 3072, %s284_s26, [#allocation6], %s1861_s28, %s1861_s28, %s1862_s29  }
  0x2a   : > { %316 = sbr.rel (%p1970_p10) target bundleno = 1028 (0x404), region = 56  ;;  %p2235_p4 = scmp.eq.s32.totalorder (!%p1970_p10), %s1942_s13, 0 }
  0x2f   : > { %1832 = dma.done.wait (%p2235_p4), [#allocation3], 3072   ;;  %p2236_p13 = pmov %p2235_p4 }
  0x30   : > { %p2237_p7 = pmov %p2235_p4 }
  0x31   : > { %1834 = vsyncadd (%p2236_p13), [#allocation3], 4294964224 }
  0x32   : > { %1836 = dma.done.wait (%p2237_p7), [#allocation6], 3072   ;;  %p2238_p6 = pmov %p2235_p4 }
  0x33   : > { %p356_p9 = scmp.lt.s32.totalorder %s1942_s13, 1  ;;  %v366_v0 = vlaneseq  ;;  %v1863_v1 = vmov 0.0   ;;  %vm1864_vm1 = vmmov 0   ;;  %v1674_v7 = vld [vmem:[%s2221_s1 + $0x28] sm:$0xff]   ;;  %v1675_v14 = vld [vmem:[%s2221_s1 + $0x20] sm:$0xff]   ;;  %v1676_v20 = vld [vmem:[%s2221_s1 + $0x18] sm:$0xff]  }
  0x34   : > { %1838 = vsyncadd (%p2238_p6), [#allocation6], 4294964224  ;;  %1528 = vmatprep.subr.bf16.mxu0 %v1863_v1  ;;  %1540 = vmatprep.mubr.msk.bf16.mxu0 %vm1864_vm1, %v1863_v1  ;;  %v1681_v24 = vld [vmem:[#allocation2 + $0x78] sm:$0xff]   ;;  %s1865_s25 = smov 32   ;;  %v1677_v26 = vld [vmem:[%s2221_s1 + $0x10] sm:$0xff]   ;;  %s1866_s24 = smov 64  }
  0x35   : > { %s357_s21 = scalar_select %p356_p9, %s1942_s13, 1  ;;  %v2013_v2 = vshrl.u32 %v366_v0, 7  ;;  %1529 = vmatpush3.bf16.msra.mxu0 %v1674_v7  ;;  %v1682_v25 = vld [vmem:[#allocation2 + $0x38] sm:$0xff]   ;;  %1457 = vmatprep.subr.bf16.mxu1 %v1681_v24  ;;  %v1684_v27 = vld [vmem:[#allocation2 + $0x70] sm:$0xff]   ;;  %v1678_v29 = vld [vmem:[%s2221_s1 + $0x8] sm:$0xff]   ;;  %vm435_vm5 = vcmask 261120  }
  0x36   : > { %1530 = vmatprep.subr.bf16.mxu0 %v1863_v1  ;;  %1458 = vmatpush3.bf16.msra.mxu1 %v1682_v25  ;;  %v1685_v28 = vld [vmem:[#allocation2 + $0x30] sm:$0xff]   ;;  %v1687_v30 = vld [vmem:[#allocation2 + $0x68] sm:$0xff]   ;;  %v1690_v32 = vld [vmem:[#allocation2 + $0x60] sm:$0xff]   ;;  %vm439_vm6 = vcmask 523264   ;;  %vm496_vm7 = vcmask 785408   ;;  %vm1867_vm10 = vmmov 1  }
  0x37   : > { %s1448_s23 = sshll.u32 %s357_s21, 3  ;;  %v373_v3 = vand.u32 15, %v2013_v2  ;;  %vm403_vm0 = vcmp.lt.s32.totalorder %v2013_v2, 2  ;;  %vm415_vm2 = vcmp.lt.s32.totalorder %v2013_v2, 1  ;;  %1459 = vmatprep.subr.bf16.mxu1 %v1684_v27  ;;  %v1688_v31 = vld [vmem:[#allocation2 + $0x28] sm:$0xff]   ;;  %v1679_v33 = vld [vmem:[%s2221_s1] sm:$0xff]  }
  0x38   : > { %s360_s27 = scalar_lea.vmem %s2220_s0, %s1448_s23  ;;  %v1691_v34 = vld [vmem:[#allocation2 + $0x20] sm:$0xff]   ;;  %v1693_v35 = vld [vmem:[#allocation2 + $0x58] sm:$0xff]   ;;  %v1683_v41 = vld [vmem:[#allocation2 + $0xb0] sm:$0xff]   ;;  %s353_s28 = sand.u32 1, %s1849_s10  }
  0x39   : > { %v362_v4 = vld [vmem:[%s360_s27] sm:$0xff]   ;;  %vm2026_vm3 = vcmp.lt.s32.totalorder %v373_v3, 1  ;;  %vm2030_vm4 = vcmp.lt.s32.totalorder %v373_v3, 2  ;;  %1531 = vmatpush3.bf16.msra.mxu0 %v1675_v14  ;;  %v1680_v37 = vld [vmem:[#allocation2 + $0xb8] sm:$0xff]   ;;  %v1686_v42 = vld [vmem:[#allocation2 + $0xa8] sm:$0xff]   ;;  %s1356_s29 = sshll.u32 %s353_s28, 4 }
  0x3a   : > { %v364_v5 = vunpack.c.l.bf16 %v362_v4  ;;  %v365_v6 = vunpack.c.h.bf16 %v362_v4  ;;  %1532 = vmatprep.subr.bf16.mxu0 %v1863_v1  ;;  %1460 = vmatpush3.bf16.msra.mxu1 %v1685_v28  ;;  %v1689_v43 = vld [vmem:[#allocation2 + $0xa0] sm:$0xff]   ;;  %v1692_v44 = vld [vmem:[#allocation2 + $0x98] sm:$0xff]   ;;  %v1695_v46 = vld [vmem:[#allocation2 + $0x90] sm:$0xff]   ;;  %s355_s17 = scalar_lea.vmem [#allocation7], %s1356_s29  ;;  %s2180_s26 = scalar_lea.sflag [#allocation4], %s353_s28 }
  0x3b   : > { %1461 = vmatprep.subr.bf16.mxu1 %v1687_v30  ;;  %v1694_v45 = vld [vmem:[#allocation2 + $0x18] sm:$0xff]   ;;  %v1696_v47 = vld [vmem:[#allocation2 + $0x50] sm:$0xff]   ;;  %v1698_v49 = vld [vmem:[#allocation2 + $0x88] sm:$0xff]   ;;  %s1264_s22 = sshll.u32 %s355_s17, 4  ;;  %s1868_s27 = smov [#allocation7]   ;;  %s2172_s22 = int_to_ptr.vmem [resolvable:$true] %s1264_s22 }
  0x3c   : > { %v402_v10 = vrot.slane %v365_v6, 6  ;;  %v413_v11 = vrot.slane %v364_v5, 7  ;;  %v414_v12 = vrot.slane %v365_v6, 7  ;;  %v401_v13 = vrot.slane %v364_v5, 6  ;;  %v1697_v48 = vld [vmem:[#allocation2 + $0x10] sm:$0xff]   ;;  %v1699_v50 = vld [vmem:[#allocation2 + $0x48] sm:$0xff]   ;;  %vm1393_vm8 = vmneg %vm2026_vm3 }
  0x3d   : > { %1533 = vmatpush3.bf16.msra.mxu0 %v1676_v20  ;;  %v1700_v51 = vld [vmem:[#allocation2 + $0x8] sm:$0xff]   ;;  %v1701_v52 = vld [vmem:[#allocation2 + $0x80] sm:$0xff]   ;;  %v1705_v55 = vld [vmem:[#allocation5 + $0x78] sm:$0xff]   ;;  %s1793_s29 = sshll.u32 %s1868_s27, 4  ;;  %s1794_s29 = int_to_ptr.vmem [resolvable:$false] %s1793_s29 }
  0x3e   : > { %v416_v15 = vsel %vm415_vm2, %v413_v11, %v414_v12  ;;  %v417_v16 = vsel %vm415_vm2, %v414_v12, %v413_v11  ;;  %v404_v17 = vsel %vm403_vm0, %v401_v13, %v402_v10  ;;  %v405_v18 = vsel %vm403_vm0, %v402_v10, %v401_v13  ;;  %1534 = vmatprep.subr.bf16.mxu0 %v1863_v1  ;;  %v1702_v53 = vld [vmem:[#allocation2 + $0x40] sm:$0xff]   ;;  %vm1397_vm9 = vmneg %vm2030_vm4  ;;  %v1709_v20 = vld [vmem:[#allocation5 + $0x30] sm:$0xff]   ;;  %s1795_s14 = scalar_lea.vmem %s1794_s29, 512  ;;  %p1796_p11 = scmp.lt.s32.totalorder %s2172_s22, %s1794_s29 }
  0x3f   : > { %v422_v19 = vsel %vm2026_vm3, 0.0, %v417_v16  ;;  %v410_v21 = vsel %vm2030_vm4, 0.0, %v405_v18  ;;  %1462 = vmatpush3.bf16.msra.mxu1 %v1688_v31  ;;  %v1703_v54 = vld [vmem:[#allocation2] sm:$0xff]   ;;  %vm2089_vm11 = vmpackc.low %vm1867_vm10, %vm1393_vm8  ;;  %v1707_v18 = vld [vmem:[#allocation5 + $0xb0] sm:$0xff]  }
  0x40   : > { %v424_v22 = vpack.c.bf16 %v416_v15, %v422_v19  ;;  %v412_v23 = vpack.c.bf16 %v404_v17, %v410_v21  ;;  %1463 = vmatprep.subr.bf16.mxu1 %v1690_v32  ;;  %v1360_v56 = vld [vmem:[%s2222_s2] ss:$0 sm:$0xff]  ;;  %vm2097_vm12 = vmpackc.low %vm1867_vm10, %vm1397_vm9  ;;  %v1706_v17 = vld [vmem:[#allocation5 + $0x38] sm:$0xff]  }
  0x41   : > { %1535 = vmatpush3.bf16.msra.mxu0 %v1677_v26  ;;  %v1708_v19 = vld [vmem:[#allocation5 + $0x70] sm:$0xff]   ;;  %v1710_v21 = vld [vmem:[#allocation5 + $0xa8] sm:$0xff]   ;;  %v1713_v24 = vld [vmem:[#allocation5 + $0xa0] sm:$0xff]  }
  0x42   : > { %426 = vrot.lane.b32.xlu0 %v424_v22, %s1865_s25  ;;  %1536 = vmatprep.subr.bf16.mxu0 %v1863_v1  ;;  %v1711_v22 = vld [vmem:[#allocation5 + $0x68] sm:$0xff]   ;;  %v1714_v25 = vld [vmem:[#allocation5 + $0x60] sm:$0xff]   ;;  %v1716_v27 = vld [vmem:[#allocation5 + $0x98] sm:$0xff]   ;;  %s1449_s25 = sshll.u32 %s1942_s13, 8  ;;  %s1789_s13 = scalar_lea.vmem %s2172_s22, 256 }
  0x43   : > { %1464 = vmatpush3.bf16.msra.mxu1 %v1691_v34  ;;  %v1715_v26 = vld [vmem:[#allocation5 + $0x20] sm:$0xff]   ;;  %v1717_v28 = vld [vmem:[#allocation5 + $0x58] sm:$0xff]   ;;  %v1719_v30 = vld [vmem:[#allocation5 + $0x90] sm:$0xff]   ;;  %p1790_p10 = scmp.ne.s32.totalorder %s2172_s22, %s1789_s13  ;;  %p1797_p0 = scmp.lt.s32.totalorder %s1795_s14, %s1789_s13 }
  0x44   : > { %1465 = vmatprep.subr.bf16.mxu1 %v1693_v35  ;;  %v1720_v31 = vld [vmem:[#allocation5 + $0x50] sm:$0xff]   ;;  %v1723_v34 = vld [vmem:[#allocation5 + $0x48] sm:$0xff]   ;;  %v1735_v13 = vld [vmem:[%s2227_s7] sm:$0xff]  }
  0x45   : > { %1537 = vmatpush3.bf16.msra.mxu0 %v1678_v29  ;;  %v1718_v29 = vld [vmem:[#allocation5 + $0x18] sm:$0xff]   ;;  %v1721_v32 = vld [vmem:[#allocation5 + $0x10] sm:$0xff]   ;;  %v1724_v35 = vld [vmem:[#allocation5 + $0x8] sm:$0xff]   ;;  %p1791_p12 = pnand %p1790_p10, %p1959_p5  ;;  %p1798_p1 = por %p1797_p0, %p1796_p11 }
  0x46   : > { %433 = vrot.lane.b32.xlu0 %v362_v4, %s1866_s24  ;;  %1538 = vmatprep.subr.bf16.mxu0 %v1863_v1  ;;  %v1704_v4 = vld [vmem:[#allocation5 + $0xb8] sm:$0xff]   ;;  %v1730_v2 = vld [vmem:[%s2227_s7 + $0x28] sm:$0xff]   ;;  %s2177_s24 = scalar_lea.hbm %s2229_s9, %s1449_s25 }
  0x47   : > { %1466 = vmatpush3.bf16.msra.mxu1 %v1694_v45  ;;  %p1792_p8 = pneg %p1791_p12 }
  0x48   : > { %1467 = vmatprep.subr.bf16.mxu1 %v1696_v47 }
  0x49   : > { %1539 = vmatpush3.bf16.msra.mxu0 %v1679_v33  ;;  %v1722_v33 = vld [vmem:[#allocation5 + $0x88] sm:$0xff]   ;;  %p1799_p3 = pnand %p1798_p1, %p1792_p8 }
  0x4a   : > { %1544 = vmatprep.subr.bf16.mxu0 %v1863_v1 }
  0x4b   : > { %1468 = vmatpush3.bf16.msra.mxu1 %v1697_v48 }
  0x4c   : > { %1469 = vmatprep.subr.bf16.mxu1 %v1699_v50 }
  0x4f   : > { %1470 = vmatpush3.bf16.msra.mxu1 %v1700_v51 }
  0x50   : > { %1471 = vmatprep.subr.bf16.mxu1 %v1702_v53 }
  0x53   : > { %1472 = vmatpush3.bf16.msra.mxu1 %v1703_v54 }
  0x54   : > { %1488 = vmatprep.subr.bf16.mxu1 %v1705_v55 }
  0xb4   : > { %v427_v36 = vpop.permute.xlu0 %426 }
  0xb5   : > { %v438_v38 = vsel %vm435_vm5, %v412_v23, %v427_v36  ;;  %v1712_v23 = vld [vmem:[#allocation5 + $0x28] sm:$0xff]   ;;  %v1725_v36 = vld [vmem:[#allocation5 + $0x80] sm:$0xff]  }
  0xb8   : > { %v434_v39 = vpop.permute.xlu0 %433 }
  0xb9   : > { %v441_v40 = vsel %vm439_vm6, %v438_v38, %v434_v39  ;;  %v1727_v38 = vld [vmem:[#allocation5] sm:$0xff]  }
  0xba   : > { %1541 = vmatmul.mubr.msk.bf16.vlgmr.msra.gmra.mxu0 %vm496_vm7, %v441_v40 }
  0xbb   : > { %1545 = vmatpush3.bf16.msra.mxu0 %v1680_v37  ;;  %1560 = vmatprep.mubr.msk.bf16.mxu0 %vm1864_vm1, %v1863_v1  ;;  %v1726_v37 = vld [vmem:[#allocation5 + $0x40] sm:$0xff]  }
  0xbc   : > { %1546 = vmatprep.subr.bf16.mxu0 %v1863_v1 }
  0xbf   : > { %1547 = vmatpush3.bf16.msra.mxu0 %v1683_v41 }
  0xc0   : > { %1548 = vmatprep.subr.bf16.mxu0 %v1863_v1 }
  0xc3   : > { %1549 = vmatpush3.bf16.msra.mxu0 %v1686_v42 }
  0xc4   : > { %1550 = vmatprep.subr.bf16.mxu0 %v1863_v1 }
  0xc7   : > { %1551 = vmatpush3.bf16.msra.mxu0 %v1689_v43  ;;  %v1368_v43 = vld [vmem:[%s2224_s4] ss:$0 sm:$0xff] }
  0xc8   : > { %1552 = vmatprep.subr.bf16.mxu0 %v1863_v1 }
  0xcb   : > { %1553 = vmatpush3.bf16.msra.mxu0 %v1692_v44 }
  0xcc   : > { %1554 = vmatprep.subr.bf16.mxu0 %v1863_v1 }
  0xcf   : > { %1555 = vmatpush3.bf16.msra.mxu0 %v1695_v46 }
  0xd0   : > { %1556 = vmatprep.subr.bf16.mxu0 %v1863_v1 }
  0xd3   : > { %1557 = vmatpush3.bf16.msra.mxu0 %v1698_v49 }
  0xd4   : > { %1558 = vmatprep.subr.bf16.mxu0 %v1863_v1 }
  0xd7   : > { %1559 = vmatpush3.bf16.msra.mxu0 %v1701_v52 }
  0xd8   : > { %1564 = vmatprep.subr.bf16.mxu0 %v1863_v1 }
 0x17a   : > { %v533_v57 = vpop.f32.mrf.mxu0 }
 0x17b   : > { %v534_v58 = vadd.f32 %v1360_v56, %v533_v57 }
 0x17c   : > { %v1542_v59 = vpop.f32.mrf.mxu0 }
 0x17d   : > { %v540_v60 = vmax.f32 %v534_v58, 0.0 }
 0x17e   : > { %v536_v61 = vpop.f32.mrf.mxu0 }
 0x17f   : > { %v537_v62 = vadd.f32 %v1360_v56, %v536_v61  ;;  %v542_v3 = vrot.slane %v540_v60, 6  ;;  %v549_v5 = vrot.slane %v540_v60, 7 }
 0x180   : > { %v1543_v63 = vpop.f32.mrf.mxu0 }
 0x181   : > { %v541_v0 = vmax.f32 %v537_v62, 0.0 }
 0x183   : > { %v543_v6 = vrot.slane %v541_v0, 6  ;;  %v550_v7 = vrot.slane %v541_v0, 7  ;;  %v556_v10 = vpack.c.bf16 %v541_v0, %v540_v60 }
 0x185   : > { %1561 = vmatmul.mubr.bf16.vlgmr.msra.gmra.mxu0 %v556_v10  ;;  %v551_v11 = vsel %vm415_vm2, %v549_v5, %v550_v7  ;;  %v552_v12 = vsel %vm415_vm2, %v550_v7, %v549_v5  ;;  %v544_v8 = vsel %vm403_vm0, %v542_v3, %v543_v6  ;;  %v545_v14 = vsel %vm403_vm0, %v543_v6, %v542_v3  ;;  %v1728_v5 = vld [vmem:[%s2227_s7 + $0x38] sm:$0xff]   ;;  %v1729_v6 = vld [vmem:[%s2227_s7 + $0x30] sm:$0xff]   ;;  %v1731_v7 = vld [vmem:[%s2227_s7 + $0x20] sm:$0xff]  }
 0x186   : > { %v1395_v9 = vpack.c.bf16 %v551_v11, %v552_v12  ;;  %v1399_v16 = vpack.c.bf16 %v544_v8, %v545_v14  ;;  %1565 = vmatpush3.bf16.msra.mxu0 %v1704_v4  ;;  %1580 = vmatprep.mubr.msk.bf16.mxu0 %vm1864_vm1, %v1863_v1  ;;  %v1732_v10 = vld [vmem:[%s2227_s7 + $0x18] sm:$0xff]   ;;  %v1733_v11 = vld [vmem:[%s2227_s7 + $0x10] sm:$0xff]   ;;  %v1734_v12 = vld [vmem:[%s2227_s7 + $0x8] sm:$0xff]  }
 0x187   : > { %1566 = vmatprep.subr.bf16.mxu0 %v1863_v1 }
 0x188   : > { %1396 = vmatprep.mubr.msk.bf16.mxu1 %vm2089_vm11, %v1395_v9 }
 0x189   : > { %1400 = vmatmul.mubr.msk.bf16.vlgmr.msra.gmra.mxu1 %vm2097_vm12, %v1399_v16  ;;  %v1401_v16 = vld [vmem:[%s2226_s6] ss:$0 sm:$0xff] }
 0x18a   : > { %1489 = vmatpush3.bf16.msra.mxu1 %v1706_v17  ;;  %1567 = vmatpush3.bf16.msra.mxu0 %v1707_v18 }
 0x18b   : > { %1490 = vmatprep.subr.bf16.mxu1 %v1708_v19  ;;  %1568 = vmatprep.subr.bf16.mxu0 %v1863_v1 }
 0x18e   : > { %1491 = vmatpush3.bf16.msra.mxu1 %v1709_v20  ;;  %1569 = vmatpush3.bf16.msra.mxu0 %v1710_v21 }
 0x18f   : > { %1570 = vmatprep.subr.bf16.mxu0 %v1863_v1  ;;  %1492 = vmatprep.subr.bf16.mxu1 %v1711_v22 }
 0x192   : > { %1493 = vmatpush3.bf16.msra.mxu1 %v1712_v23  ;;  %1571 = vmatpush3.bf16.msra.mxu0 %v1713_v24 }
 0x193   : > { %1572 = vmatprep.subr.bf16.mxu0 %v1863_v1  ;;  %1494 = vmatprep.subr.bf16.mxu1 %v1714_v25 }
 0x196   : > { %1495 = vmatpush3.bf16.msra.mxu1 %v1715_v26  ;;  %1573 = vmatpush3.bf16.msra.mxu0 %v1716_v27 }
 0x197   : > { %1574 = vmatprep.subr.bf16.mxu0 %v1863_v1  ;;  %1496 = vmatprep.subr.bf16.mxu1 %v1717_v28 }
 0x19a   : > { %1497 = vmatpush3.bf16.msra.mxu1 %v1718_v29  ;;  %1575 = vmatpush3.bf16.msra.mxu0 %v1719_v30  ;;  %v1434_v29 = vld [vmem:[%s2228_s8] ss:$0 sm:$0xff] }
 0x19b   : > { %1576 = vmatprep.subr.bf16.mxu0 %v1863_v1  ;;  %1498 = vmatprep.subr.bf16.mxu1 %v1720_v31 }
 0x19e   : > { %1499 = vmatpush3.bf16.msra.mxu1 %v1721_v32  ;;  %1577 = vmatpush3.bf16.msra.mxu0 %v1722_v33 }
 0x19f   : > { %1578 = vmatprep.subr.bf16.mxu0 %v1863_v1  ;;  %1500 = vmatprep.subr.bf16.mxu1 %v1723_v34 }
 0x1a2   : > { %1501 = vmatpush3.bf16.msra.mxu1 %v1724_v35  ;;  %1579 = vmatpush3.bf16.msra.mxu0 %v1725_v36 }
 0x1a3   : > { %1502 = vmatprep.subr.bf16.mxu1 %v1726_v37 }
 0x1a6   : > { %1503 = vmatpush3.bf16.msra.mxu1 %v1727_v38 }
 0x1a7   : > { %1584 = vmatprep.subr.bf16.mxu1 %v1863_v1 }
 0x245   : > { %v830_v39 = vpop.f32.mrf.mxu0 }
 0x247   : > { %v1562_v40 = vpop.f32.mrf.mxu0 }
 0x249   : > { %v1473_v41 = vpop.f32.mrf.mxu1  ;;  %v833_v42 = vpop.f32.mrf.mxu0 }
 0x24b   : > { %v1474_v44 = vpop.f32.mrf.mxu1  ;;  %v1563_v45 = vpop.f32.mrf.mxu0 }
 0x24c   : > { %v1475_v46 = vadd.f32 %v1474_v44, %v1473_v41 }
 0x24d   : > { %v1476_v47 = vpop.f32.mrf.mxu1 }
 0x24e   : > { %v790_v48 = vadd.f32 %v1475_v46, %v1368_v43 }
 0x24f   : > { %v1477_v49 = vpop.f32.mrf.mxu1 }
 0x250   : > { %v831_v50 = vadd.f32 %v830_v39, %v790_v48  ;;  %v1478_v51 = vadd.f32 %v1477_v49, %v1476_v47 }
 0x252   : > { %v793_v52 = vadd.f32 %v1478_v51, %v1368_v43  ;;  %v837_v53 = vmax.f32 %v831_v50, 0.0 }
 0x254   : > { %v834_v54 = vadd.f32 %v833_v42, %v793_v52  ;;  %v839_v56 = vrot.slane %v837_v53, 6  ;;  %v846_v57 = vrot.slane %v837_v53, 7 }
 0x256   : > { %v838_v55 = vmax.f32 %v834_v54, 0.0 }
 0x258   : > { %v840_v58 = vrot.slane %v838_v55, 6  ;;  %v847_v59 = vrot.slane %v838_v55, 7  ;;  %v853_v60 = vpack.c.bf16 %v838_v55, %v837_v53 }
 0x25a   : > { %1581 = vmatmul.mubr.bf16.vlgmr.msra.gmra.mxu0 %v853_v60  ;;  %v848_v61 = vsel %vm415_vm2, %v846_v57, %v847_v59  ;;  %v849_v62 = vsel %vm415_vm2, %v847_v59, %v846_v57  ;;  %v841_v63 = vsel %vm403_vm0, %v839_v56, %v840_v58  ;;  %v842_v0 = vsel %vm403_vm0, %v840_v58, %v839_v56 }
 0x25b   : > { %v1428_v3 = vpack.c.bf16 %v848_v61, %v849_v62  ;;  %v1432_v4 = vpack.c.bf16 %v841_v63, %v842_v0 }
 0x25d   : > { %1429 = vmatprep.mubr.msk.bf16.mxu1 %vm2089_vm11, %v1428_v3 }
 0x25e   : > { %1433 = vmatmul.mubr.msk.bf16.vlgmr.msra.gmra.mxu1 %vm2097_vm12, %v1432_v4 }
 0x25f   : > { %1585 = vmatpush3.bf16.msra.mxu1 %v1728_v5  ;;  %1600 = vmatprep.mubr.msk.bf16.mxu1 %vm1864_vm1, %v1863_v1 }
 0x260   : > { %1586 = vmatprep.subr.bf16.mxu1 %v1863_v1 }
 0x263   : > { %1587 = vmatpush3.bf16.msra.mxu1 %v1729_v6 }
 0x264   : > { %1588 = vmatprep.subr.bf16.mxu1 %v1863_v1 }
 0x267   : > { %1589 = vmatpush3.bf16.msra.mxu1 %v1730_v2 }
 0x268   : > { %1590 = vmatprep.subr.bf16.mxu1 %v1863_v1 }
 0x26b   : > { %1591 = vmatpush3.bf16.msra.mxu1 %v1731_v7 }
 0x26c   : > { %1592 = vmatprep.subr.bf16.mxu1 %v1863_v1 }
 0x26f   : > { %1593 = vmatpush3.bf16.msra.mxu1 %v1732_v10 }
 0x270   : > { %1594 = vmatprep.subr.bf16.mxu1 %v1863_v1 }
 0x273   : > { %1595 = vmatpush3.bf16.msra.mxu1 %v1733_v11 }
 0x274   : > { %1596 = vmatprep.subr.bf16.mxu1 %v1863_v1 }
 0x277   : > { %1597 = vmatpush3.bf16.msra.mxu1 %v1734_v12 }
 0x278   : > { %1598 = vmatprep.subr.bf16.mxu1 %v1863_v1 }
 0x27b   : > { %1599 = vmatpush3.bf16.msra.mxu1 %v1735_v13 }
 0x31a   : > { %v1127_v8 = vpop.f32.mrf.mxu0 }
 0x31c   : > { %v1582_v14 = vpop.f32.mrf.mxu0 }
 0x31e   : > { %v1504_v9 = vpop.f32.mrf.mxu1  ;;  %v1130_v15 = vpop.f32.mrf.mxu0 }
 0x320   : > { %v1505_v17 = vpop.f32.mrf.mxu1  ;;  %v1583_v18 = vpop.f32.mrf.mxu0 }
 0x321   : > { %v1506_v19 = vadd.f32 %v1505_v17, %v1504_v9 }
 0x322   : > { %v1507_v20 = vpop.f32.mrf.mxu1 }
 0x323   : > { %v1087_v21 = vadd.f32 %v1506_v19, %v1401_v16 }
 0x324   : > { %v1508_v1 = vpop.f32.mrf.mxu1 }
 0x325   : > { %v1509_v22 = vadd.f32 %v1508_v1, %v1507_v20  ;;  %v1128_v23 = vadd.f32 %v1127_v8, %v1087_v21 }
 0x327   : > { %v1090_v24 = vadd.f32 %v1509_v22, %v1401_v16  ;;  %v1134_v26 = vmax.f32 %v1128_v23, 0.0 }
 0x329   : > { %v1131_v25 = vadd.f32 %v1130_v15, %v1090_v24 }
 0x32b   : > { %v1135_v27 = vmax.f32 %v1131_v25, 0.0 }
 0x32d   : > { %v1136_v28 = vpack.c.bf16 %v1135_v27, %v1134_v26 }
 0x32f   : > { %1601 = vmatmul.mubr.bf16.vlgmr.msra.gmra.mxu1 %v1136_v28 }
 0x3ef   : > { %v1241_v30 = vpop.f32.mrf.mxu1 }
 0x3f0   : > { %v1242_v31 = vadd.f32 %v1434_v29, %v1241_v30 }
 0x3f1   : > { %v1602_v32 = vpop.f32.mrf.mxu1 }
 0x3f2   : > { %1248 = vst.msk [vmem:[%s355_s17] sm:$0xff] %vm439_vm6, %v1242_v31 }
 0x3f3   : > { %v1244_v33 = vpop.f32.mrf.mxu1 }
 0x3f4   : > { %v1245_v34 = vadd.f32 %v1434_v29, %v1244_v33 }
 0x3f5   : > { %v1603_v35 = vpop.f32.mrf.mxu1 }
 0x3f6   : > { %1249 = vst.msk [vmem:[%s355_s17 + $0x8] sm:$0xff] %vm439_vm6, %v1245_v34 }
 0x3f7   : > { %1802 = shalt.err (!%p1799_p3)
}
 0x3f8   : > { %s1803_s28 = scalar_lea.hbm %s2177_s24, 256  ;;  %s1807_s25 = scalar_lea.hbm %s2229_s9, 512 }
 0x3f9   : > { %p1804_p2 = scmp.ne.s32.totalorder %s2177_s24, %s1803_s28  ;;  %p1808_p7 = scmp.lt.s32.totalorder %s2177_s24, %s2229_s9 }
 0x3fa   : > { %p1809_p6 = scmp.lt.s32.totalorder %s1807_s25, %s1803_s28 }
 0x3fb   : > { %p1805_p4 = pnand %p1804_p2, %p1959_p5 }
 0x3fc   : > { %p1810_p9 = por %p1809_p6, %p1808_p7 }
 0x3fd   : > { %p1806_p13 = pneg %p1805_p4 }
 0x3ff   : > { %p1811_p10 = pnand %p1810_p9, %p1806_p13 }
 0x401   : > { %1814 = shalt.err (!%p1811_p10)
}
 0x402   : > { %s1869_s13 = smov 128   ;;  %s1870_s27 = smov 8  }
 0x403   : > { %1612 = dma.vmem_to_hbm [thread:$0]  (%p1959_p5), %s2172_s22, 256, %s2177_s24, %s2180_s26, %s1869_s13, %s1869_s13, %s1870_s27  }
 0x404 PF: > { %p1629_p12 = scmp.ge.s32.totalorder %s1857_s12, 2  ;;  %s1279_s29 = sand.u32 1, %s1845_s30  }
 0x405   : > { %p2247_p8 = scmp.ne.s32.totalorder %s2232_s20, 0  ;;  %s1280_s14 = scalar_lea.sflag [#allocation4], %s1279_s29 }
 0x407   : > { %p1622_p11 = pnand %p1629_p12, %p2247_p8 }
 0x409   : > { %p1623_p0 = pneg %p1622_p11 }
 0x40b   : > { %1840 = dma.done.wait (%p1623_p0), %s1280_s14, 256  }
 0x40c   : > { %1842 = vsyncadd (%p1623_p0), %s1280_s14, 4294967040  ;;  %p21_p1 = scmp.ge.s32.totalorder %s1946_s15, 4   ;;  %s2248_s30 = smov %s1849_s10 }
 0x40d   : > { %s2249_s10 = smov %s1853_s11  ;;  %s2250_s11 = smov %s1957_s18 }
 0x40e   : > { %s2251_s12 = smov %s1946_s15  ;;  %23 = sbr.rel (!%p21_p1) target bundleno = 5 (0x5), region = 100 }
 0x413   :  { %1285 = vsyncpa [#allocation3], 1 }
 0x414   :  { %1287 = vsyncpa [#allocation3 + $0x1], 1 }
 0x415   :  { %1288 = vsyncpa [#allocation6], 1 }
 0x416   :  { %1289 = vsyncpa [#allocation4], 1 }
 0x417   :  { %1291 = vsyncpa [#allocation4 + $0x1], 1 }

</bundles_post_ra>
